<compile_context>
chip_gen: v6e
topology: v6e:2x2x1
jax: 0.10.0
libtpu: 0.0.40
codegen_flags: <defaults>
</compile_context>

<pallas_src>
import jax
import jax.numpy as jnp
from jax.experimental import pallas as pl
from jax.experimental.pallas import tpu as pltpu


def _copy_kernel(x_ref, o_ref):
    # Element-wise copy (the "clone" hot path).
    o_ref[...] = x_ref[...]


def _pallas_copy_2d(x2d, block_rows):
    rows, lanes = x2d.shape
    grid = (pl.cdiv(rows, block_rows),)
    return pl.pallas_call(
        _copy_kernel,
        out_shape=jax.ShapeDtypeStruct((rows, lanes), x2d.dtype),
        grid=grid,
        in_specs=[pl.BlockSpec((block_rows, lanes), lambda i: (i, 0))],
        out_specs=pl.BlockSpec((block_rows, lanes), lambda i: (i, 0)),
        compiler_params=pltpu.CompilerParams(
            dimension_semantics=("parallel",)
        ),
    )(x2d)


def process_action(action: jax.Array):
    """Pallas equivalent of ProcessAction.forward.

    Returns (action_transformed, action_transformed): two references to the
    same copied array, mirroring the PyTorch module returning one tensor twice.
    """
    orig_shape = action.shape
    n = action.size

    if n % 128 == 0:
        # Lane-dense path: reshape so the last dim is exactly 128 lanes.
        rows = n // 128
        x2d = action.reshape(rows, 128)
        if rows <= 1024:
            # Single full-array block (block_shape == array dims is allowed).
            block_rows = rows
        else:
            # 1024 x 128 x 4B = 0.5 MiB per buffer; with in+out double
            # buffered that's ~2 MiB — far below every scoped-VMEM default.
            block_rows = 1024  # multiple of 8 -> satisfies (8, 128) tiling
        cloned = _pallas_copy_2d(x2d, block_rows).reshape(orig_shape)
    else:
        # Fallback for element counts not divisible by 128: one full block
        # over a flattened (1, n) view (masked stores, but always correct).
        x2d = action.reshape(1, n)
        cloned = _pallas_copy_2d(x2d, 1).reshape(orig_shape)

    # TODO(synk): `requires_grad = True` has no runtime analog in JAX
    # (gradients are taken functionally via jax.grad); the data semantics
    # (a fresh copy of `action`) are fully reproduced.
    return cloned, cloned


if __name__ == "__main__":
    key = jax.random.PRNGKey(0)
    batch, action_dim = 8, 32  # action_shape = 32
    action = jax.random.normal(key, (batch, action_dim), dtype=jnp.float32)

    out_a, out_b = process_action(action)
    jax.block_until_ready((out_a, out_b))

    assert out_a.shape == action.shape and out_b.shape == action.shape
    assert jnp.allclose(out_a, action) and jnp.allclose(out_b, action)
    print("KERNEL_OK")
</pallas_src>

<mosaic_0001>
module attributes {stable_mosaic.version = 11 : i64} {
  func.func @_copy_kernel(%arg0: i32, %arg1: memref<2x128xf32, #tpu.memory_space<vmem>>, %arg2: memref<2x128xf32, #tpu.memory_space<vmem>>) attributes {dimension_semantics = [#tpu.dimension_semantics<parallel>], iteration_bounds = array<i64: 1>, scalar_prefetch = 0 : i64, scratch_operands = 0 : i64, tpu.core_type = #tpu.core_type<tc>, window_params = [{transform_indices = @transform_0, window_bounds = array<i64: 2, 128>}, {transform_indices = @transform_1, window_bounds = array<i64: 2, 128>}]} {
    %c0 = arith.constant 0 : index
    %c0_0 = arith.constant 0 : index
    %0 = vector.load %arg1[%c0, %c0_0] : memref<2x128xf32, #tpu.memory_space<vmem>>, vector<2x128xf32>
    %c0_1 = arith.constant 0 : index
    %c0_2 = arith.constant 0 : index
    %1 = vector.load %arg2[%c0_1, %c0_2] : memref<2x128xf32, #tpu.memory_space<vmem>>, vector<2x128xf32>
    tpu.vector_store %arg2[%c0_1, %c0_2], %0 {strides = array<i32>} : memref<2x128xf32, #tpu.memory_space<vmem>>, vector<2x128xf32>,
    return
  }
  func.func @transform_0(%arg0: i32) -> (i32, i32) {
    %c0_i32 = arith.constant 0 : i32
    %c0_i32_0 = arith.constant 0 : i32
    return %arg0, %c0_i32 : i32, i32
  }
  func.func @transform_1(%arg0: i32) -> (i32, i32) {
    %c0_i32 = arith.constant 0 : i32
    %c0_i32_0 = arith.constant 0 : i32
    return %arg0, %c0_i32 : i32, i32
  }
}

</mosaic_0001>

<bundles_post_ra>
// kernel: tpu_custom_call.1
= control target key start
LH: loop header
LB: loop body
LE: loop exit
PB: predicated region body
PF: predicated region fallthrough
CT: control target
= control target key end

     0   :  { %6 = vsyncpa [#allocation3], 0  ;;  %s102_s0 = inlined_call_operand.hbm [shape: f32[2,128], index: 0, kind: input, shape index: {}]   ;;  %s103_s1 = inlined_call_operand.hbm [shape: f32[2,128], index: 1, kind: output, shape index: {}]  }
   0x1   :  { %7 = vsyncpa [#allocation4], 0  ;;  %s84_s6 = smov [#allocation2]  }
   0x2   :  { %s14_s7 = sshll.u32 %s84_s6, 4  ;;  %s15_s7 = int_to_ptr.vmem [resolvable:$true] %s14_s7 }
   0x3   :  { %s48_s8 = scalar_lea.vmem %s15_s7, 32  ;;  %p53_p1 = scmp.lt.s32.totalorder %s15_s7, %s15_s7 }
   0x4   :  { %p49_p0 = scmp.ne.s32.totalorder %s15_s7, %s48_s8  ;;  %p54_p2 = scmp.lt.s32.totalorder %s48_s8, %s48_s8 }
   0x6   :  { %p55_p3 = por %p54_p2, %p53_p1 }
   0x8   :  { %p56_p4 = pnand %p55_p3, %p49_p0 }
   0xa   :  { %59 = shalt.err (!%p56_p4)
}
   0xb   :  { %17 = dma.hbm_to_vmem [thread:$0]  %s102_s0, 32, %s15_s7, [#allocation3]  }
   0xc   :  { %80 = dma.done.wait [#allocation3], 32  }
   0xd   :  { %81 = vsyncadd [#allocation3], 4294967264  ;;  %s85_s11 = smov [#allocation5]   ;;  %v21_v0 = vld [vmem:[#allocation2] sm:$0x3] }
   0xe   :  { %s29_s12 = sshll.u32 %s85_s11, 4  ;;  %22 = vst [vmem:[#allocation5] sm:$0x3] %v21_v0  ;;  %s30_s12 = int_to_ptr.vmem [resolvable:$true] %s29_s12 }
   0xf   :  { %s60_s13 = scalar_lea.vmem %s30_s12, 32  ;;  %p65_p6 = scmp.lt.s32.totalorder %s30_s12, %s30_s12 }
  0x10   :  { %p61_p5 = scmp.ne.s32.totalorder %s30_s12, %s60_s13  ;;  %p66_p7 = scmp.lt.s32.totalorder %s60_s13, %s60_s13 }
  0x12   :  { %p67_p8 = por %p66_p7, %p65_p6 }
  0x14   :  { %p68_p9 = pnand %p67_p8, %p61_p5 }
  0x16   :  { %71 = shalt.err (!%p68_p9)
}
  0x17   :  { %32 = dma.vmem_to_hbm [thread:$0]  %s30_s12, 32, %s103_s1, [#allocation4]  }
  0x18   :  { %82 = dma.done.wait [#allocation4], 32  }
  0x19   :  { %83 = vsyncadd [#allocation4], 4294967264 }
  0x1a   :  { %36 = vsyncpa [#allocation3], 1 }
  0x1b   :  { %37 = vsyncpa [#allocation4], 1 }

</bundles_post_ra>
